<compile_context>
chip_gen: v6e
topology: v6e:2x2x1
jax: 0.10.0
libtpu: 0.0.40
codegen_flags: <defaults>
</compile_context>

<pallas_src>
import functools

import jax
import jax.numpy as jnp
import numpy as np
from jax import lax
from jax.experimental import pallas as pl
from jax.experimental.pallas import tpu as pltpu


def _round_up(v, m):
    return ((v + m - 1) // m) * m


def _vmem_capacity_bytes(default=64 << 20):
    """Physical per-core VMEM; conservative 64 MiB (v7x) fallback."""
    try:
        info = pltpu.get_tpu_info()
        cap = getattr(info, "vmem_capacity_bytes", None)
        if cap:
            return int(cap)
    except Exception:
        pass
    return default


def _pick_hw_tile(hw, ch, x_bytes, vmem_budget_bytes, thw_cap):
    """Largest lane-aligned spatial tile whose double-buffered feature stream
    fits the VMEM budget, chosen to minimize tail padding."""
    per_col = 2 * ch * x_bytes                                  # double-buffered y column
    budget_cols = max(128, (vmem_budget_bytes // per_col) // 128 * 128)
    thw = max(128, min(_round_up(thw_cap, 128), budget_cols))
    if thw >= hw:
        return hw, 1                                            # single block == full extent
    num_k = pl.cdiv(hw, thw)
    thw = _round_up(pl.cdiv(hw, num_k), 128)                    # minimize tail overshoot
    num_k = pl.cdiv(hw, thw)
    return thw, num_k


def _gram_mse_kernel(proj_ref, y_ref, tgt_ref, out_ref, gram_acc, *,
                     hw, thw, n_axis, compute_dtype):
    """grid = (batch, hw_chunk); gram accumulates in VMEM, SSE at last chunk."""
    k = pl.program_id(1)

    @pl.when(k == 0)
    def _():
        gram_acc[...] = jnp.zeros_like(gram_acc)

    proj = proj_ref[0]                                   # (a_pad, ch) compute_dtype
    y = y_ref[0]                                         # (ch, thw)   raw x chunk (f32)

    if hw % thw != 0:
        # Last chunk extends past H*W: zero the out-of-bounds lanes in-kernel
        # (the OOB region of the block is unspecified; mask before the cast).
        lim = hw - k * thw
        col = lax.broadcasted_iota(jnp.int32, y.shape, 1)
        y = jnp.where(col < lim, y, 0.0)

    y = y.astype(compute_dtype)
    # (a_pad, thw) f32 accumulation on the MXU.
    yp = jnp.dot(proj, y, preferred_element_type=jnp.float32)
    # gram += yp @ yp^T, contracting the HW dim of both operands directly
    # (avoids the explicit .T / XLU relayout of a wide (A, thw) tile).
    gram_acc[...] += lax.dot_general(
        yp, yp,
        dimension_numbers=(((1,), (1,)), ((), ())),
        preferred_element_type=jnp.float32)

    @pl.when(k == pl.num_programs(1) - 1)
    def _():
        gram = gram_acc[...] * (1.0 / (hw * n_axis))
        diff = gram - tgt_ref[0]
        sse = jnp.sum(diff * diff)                       # per-batch partial SSE
        out_ref[...] = jnp.full((1, 1, 1), sse, dtype=jnp.float32)


def gram_matrix_loss_random_axis(x, proj, target, *, compute_dtype=jnp.bfloat16,
                                 thw_cap=8192):
    """Pallas implementation of GramMatrixLossRandomAxis.forward(x)."""
    bsz, ch, h, w = x.shape
    n_axis = proj.shape[1]
    hw = h * w

    a_pad = _round_up(n_axis, 16)            # bf16 sublane-pair alignment

    # Generation-aware VMEM budget for the feature stream (the only big buffer).
    cap = _vmem_capacity_bytes()
    budget = max(8 << 20, min(cap - (16 << 20), int(cap * 0.7)))
    x_bytes = jnp.dtype(x.dtype).itemsize
    thw, num_k = _pick_hw_tile(hw, ch, x_bytes, budget, thw_cap)
    vmem_limit = int(min(cap, budget + (16 << 20)))

    # Features: free reshape of x, no pad / no cast copy in HBM.
    y = x.reshape(bsz, ch, hw)
    # proj / target are tiny: pad the A dim host-side (zero rows contribute 0).
    proj_p = jnp.pad(proj, ((0, 0), (0, a_pad - n_axis), (0, 0))).astype(compute_dtype)
    tgt_p = jnp.pad(target.astype(jnp.float32),
                    ((0, 0), (0, a_pad - n_axis), (0, a_pad - n_axis)))

    kernel = functools.partial(_gram_mse_kernel, hw=hw, thw=thw, n_axis=n_axis,
                               compute_dtype=compute_dtype)

    partial_sse = pl.pallas_call(
        kernel,
        out_shape=jax.ShapeDtypeStruct((bsz, 1, 1), jnp.float32),
        grid_spec=pltpu.PrefetchScalarGridSpec(
            num_scalar_prefetch=0,
            grid=(bsz, num_k),
            in_specs=[
                pl.BlockSpec((1, a_pad, ch), lambda b, k: (b, 0, 0)),     # proj
                pl.BlockSpec((1, ch, thw), lambda b, k: (b, 0, k)),       # features (raw x)
                pl.BlockSpec((1, a_pad, a_pad), lambda b, k: (b, 0, 0)),  # target gram
            ],
            out_specs=pl.BlockSpec((1, 1, 1), lambda b, k: (b, 0, 0)),    # per-batch SSE
            scratch_shapes=[pltpu.VMEM((a_pad, a_pad), jnp.float32)],     # gram accumulator
        ),
        compiler_params=pltpu.CompilerParams(
            dimension_semantics=("parallel", "arbitrary"),  # batch parallel, HW reduce
            vmem_limit_bytes=vmem_limit),
    )(proj_p, y, tgt_p)

    # F.mse_loss(reduction='mean'): total SSE / (b * A * A).
    return jnp.sum(partial_sse) / (bsz * n_axis * n_axis)


# ----------------------------------------------------------------------------
# Plain-JAX helpers (parameter setup / reference), mirroring the torch __init__.
# ----------------------------------------------------------------------------
def gram_matrix_ref(y, proj, n_axis, compute_dtype=jnp.float32):
    bsz, ch, h, w = y.shape
    yf = y.reshape(bsz, ch, h * w).astype(compute_dtype)
    p = proj.astype(compute_dtype)
    yp = jnp.einsum('bac,bcs->bas', p, yf, preferred_element_type=jnp.float32)
    g = jnp.einsum('bas,bts->bat', yp, yp, preferred_element_type=jnp.float32)
    return g / (h * w * n_axis)


def make_module_params(key, target_feature, n_axis_frac):
    """Deterministic re-implementation of GramMatrixLossRandomAxis.__init__."""
    # TODO(synk): random init / target construction is host-side JAX (no kernel
    # needed); only the forward pass is a Pallas kernel.
    bsz, ch, h, w = target_feature.shape
    n_axis = max(1, int(n_axis_frac * ch))
    proj = jnp.zeros((bsz, n_axis, ch), jnp.float32)
    rows = jnp.arange(n_axis)
    for b in range(bsz):
        key, k_mask, k_sign = jax.random.split(key, 3)
        mask = jax.random.randint(k_mask, (n_axis,), 0, ch)        # random channel per row
        sign = jnp.where(jax.random.bernoulli(k_sign), 1.0, -1.0)  # single +/-1 per batch
        proj = proj.at[b, rows, mask].set(sign)
    target = gram_matrix_ref(target_feature, proj, n_axis)          # .detach() equivalent, f32
    return proj, target, n_axis


if __name__ == "__main__":
    key = jax.random.PRNGKey(0)
    k_tf, k_x, k_init, k_tf2, k_x2, k_init2 = jax.random.split(key, 6)

    # --- case 1: module-default small shape (single HW chunk) --------------
    B, C, H, W = 2, 4, 16, 16
    n_axis_frac = 0.5   # -> n_axis = max(1, int(0.5 * 4)) = 2
    target_feature = jax.random.normal(k_tf, (B, C, H, W), jnp.float32)
    x = jax.random.normal(k_x, (B, C, H, W), jnp.float32)
    proj, target, n_axis = make_module_params(k_init, target_feature, n_axis_frac)

    loss = jax.block_until_ready(gram_matrix_loss_random_axis(x, proj, target))
    # Reference with the same bf16 input quantization as the kernel.
    g_bf16 = gram_matrix_ref(x, proj, n_axis, compute_dtype=jnp.bfloat16)
    np.testing.assert_allclose(np.asarray(loss),
                               np.asarray(jnp.mean((g_bf16 - target) ** 2)),
                               rtol=1e-3, atol=1e-6)

    # f32 compute mode: matches the pure-f32 torch reference tightly.
    loss_f32 = jax.block_until_ready(
        gram_matrix_loss_random_axis(x, proj, target, compute_dtype=jnp.float32))
    g_f32 = gram_matrix_ref(x, proj, n_axis, compute_dtype=jnp.float32)
    np.testing.assert_allclose(np.asarray(loss_f32),
                               np.asarray(jnp.mean((g_f32 - target) ** 2)),
                               rtol=1e-5, atol=1e-7)

    # --- case 2: multi-chunk grid + masked spatial tail (hw=144, thw=128) ---
    B2, C2, H2, W2 = 1, 8, 12, 12
    target_feature2 = jax.random.normal(k_tf2, (B2, C2, H2, W2), jnp.float32)
    x2 = jax.random.normal(k_x2, (B2, C2, H2, W2), jnp.float32)
    proj2, target2, n_axis2 = make_module_params(k_init2, target_feature2, 0.5)

    loss2 = jax.block_until_ready(
        gram_matrix_loss_random_axis(x2, proj2, target2, thw_cap=128))
    g2 = gram_matrix_ref(x2, proj2, n_axis2, compute_dtype=jnp.bfloat16)
    np.testing.assert_allclose(np.asarray(loss2),
                               np.asarray(jnp.mean((g2 - target2) ** 2)),
                               rtol=1e-3, atol=1e-6)

    print("KERNEL_OK")
</pallas_src>

<mosaic_0001>
module attributes {stable_mosaic.version = 11 : i64} {
  func.func @_gram_mse_kernel(%arg0: i32, %arg1: i32, %arg2: memref<1x16x4xbf16, #tpu.memory_space<vmem>>, %arg3: memref<1x4x256xf32, #tpu.memory_space<vmem>>, %arg4: memref<1x16x16xf32, #tpu.memory_space<vmem>>, %arg5: memref<1x1x1xf32, #tpu.memory_space<vmem>>, %arg6: memref<16x16xf32, #tpu.memory_space<vmem>>) attributes {dimension_semantics = [#tpu.dimension_semantics<parallel>, #tpu.dimension_semantics<arbitrary>], iteration_bounds = array<i64: 2, 1>, scalar_prefetch = 0 : i64, scratch_operands = 1 : i64, tpu.core_type = #tpu.core_type<tc>, window_params = [{transform_indices = @transform_0, window_bounds = array<i64: 1, 16, 4>}, {transform_indices = @transform_1, window_bounds = array<i64: 1, 4, 256>}, {transform_indices = @transform_2, window_bounds = array<i64: 1, 16, 16>}, {transform_indices = @transform_3, window_bounds = array<i64: 1, 1, 1>}]} {
    %c0_i32 = arith.constant 0 : i32
    %0 = arith.cmpi eq, %arg1, %c0_i32 : i32
    %1 = arith.extui %0 : i1 to i32
    %c0_i32_0 = arith.constant 0 : i32
    %2 = arith.cmpi ne, %1, %c0_i32_0 : i32
    scf.if %2 {
      %cst_13 = arith.constant 0.000000e+00 : f32
      %16 = vector.broadcast %cst_13 : f32 to vector<16x16xf32>
      %c0_14 = arith.constant 0 : index
      %c0_15 = arith.constant 0 : index
      %17 = vector.load %arg6[%c0_14, %c0_15] : memref<16x16xf32, #tpu.memory_space<vmem>>, vector<16x16xf32>
      tpu.vector_store %arg6[%c0_14, %c0_15], %16 {strides = array<i32>} : memref<16x16xf32, #tpu.memory_space<vmem>>, vector<16x16xf32>,
    } else {
    }
    %c0 = arith.constant 0 : index
    %c0_1 = arith.constant 0 : index
    %c0_2 = arith.constant 0 : index
    %3 = vector.load %arg2[%c0, %c0_1, %c0_2] : memref<1x16x4xbf16, #tpu.memory_space<vmem>>, vector<1x16x4xbf16>
    %4 = vector.shape_cast %3 : vector<1x16x4xbf16> to vector<16x4xbf16>
    %c0_3 = arith.constant 0 : index
    %c0_4 = arith.constant 0 : index
    %c0_5 = arith.constant 0 : index
    %5 = vector.load %arg3[%c0_3, %c0_4, %c0_5] : memref<1x4x256xf32, #tpu.memory_space<vmem>>, vector<1x4x256xf32>
    %6 = vector.shape_cast %5 : vector<1x4x256xf32> to vector<4x256xf32>
    %7 = arith.truncf %6 : vector<4x256xf32> to vector<4x256xbf16>
    %cst = arith.constant dense<0.000000e+00> : vector<16x256xf32>
    %8 = tpu.matmul %4, %7, %cst {dimension_numbers = #tpu.dot_dimension_numbers<[1], [0], [0], [1], [0, 0, 1, 1], [], []>} : vector<16x4xbf16>, vector<4x256xbf16>, vector<16x256xf32> -> vector<16x256xf32>
    %c0_6 = arith.constant 0 : index
    %c0_7 = arith.constant 0 : index
    %9 = vector.load %arg6[%c0_6, %c0_7] : memref<16x16xf32, #tpu.memory_space<vmem>>, vector<16x16xf32>
    %cst_8 = arith.constant dense<0.000000e+00> : vector<16x16xf32>
    %10 = tpu.matmul %8, %8, %cst_8 {dimension_numbers = #tpu.dot_dimension_numbers<[1], [1], [0], [0], [0, 0, 1, 0], [], []>} : vector<16x256xf32>, vector<16x256xf32>, vector<16x16xf32> -> vector<16x16xf32>
    %11 = arith.addf %9, %10 : vector<16x16xf32>
    %c0_9 = arith.constant 0 : index
    %c0_10 = arith.constant 0 : index
    %12 = vector.load %arg6[%c0_9, %c0_10] : memref<16x16xf32, #tpu.memory_space<vmem>>, vector<16x16xf32>
    tpu.vector_store %arg6[%c0_9, %c0_10], %11 {strides = array<i32>} : memref<16x16xf32, #tpu.memory_space<vmem>>, vector<16x16xf32>,
    %c0_i32_11 = arith.constant 0 : i32
    %13 = arith.cmpi eq, %arg1, %c0_i32_11 : i32
    %14 = arith.extui %13 : i1 to i32
    %c0_i32_12 = arith.constant 0 : i32
    %15 = arith.cmpi ne, %14, %c0_i32_12 : i32
    scf.if %15 {
      %c0_13 = arith.constant 0 : index
      %c0_14 = arith.constant 0 : index
      %16 = vector.load %arg6[%c0_13, %c0_14] : memref<16x16xf32, #tpu.memory_space<vmem>>, vector<16x16xf32>
      %cst_15 = arith.constant 0.001953125 : f32
      %17 = vector.broadcast %cst_15 : f32 to vector<16x16xf32>
      %18 = arith.mulf %16, %17 : vector<16x16xf32>
      %c0_16 = arith.constant 0 : index
      %c0_17 = arith.constant 0 : index
      %c0_18 = arith.constant 0 : index
      %19 = vector.load %arg4[%c0_16, %c0_17, %c0_18] : memref<1x16x16xf32, #tpu.memory_space<vmem>>, vector<1x16x16xf32>
      %20 = vector.shape_cast %19 : vector<1x16x16xf32> to vector<16x16xf32>
      %21 = arith.subf %18, %20 : vector<16x16xf32>
      %22 = arith.mulf %21, %21 : vector<16x16xf32>
      %23 = vector.shape_cast %22 : vector<16x16xf32> to vector<1x16x16xf32>
      %cst_19 = arith.constant dense<0.000000e+00> : vector<1xf32>
      %24 = vector.multi_reduction <add>, %23, %cst_19 [1, 2] : vector<1x16x16xf32> to vector<1xf32>
      %25 = vector.shape_cast %24 : vector<1xf32> to vector<1x1x1xf32>
      %26 = vector.extract %25[0, 0, 0] : f32 from vector<1x1x1xf32>
      %27 = vector.broadcast %26 : f32 to vector<1x1x1xf32>
      %c0_20 = arith.constant 0 : index
      %c0_21 = arith.constant 0 : index
      %c0_22 = arith.constant 0 : index
      %28 = vector.load %arg5[%c0_20, %c0_21, %c0_22] : memref<1x1x1xf32, #tpu.memory_space<vmem>>, vector<1x1x1xf32>
      tpu.vector_store %arg5[%c0_20, %c0_21, %c0_22], %27 {strides = array<i32>} : memref<1x1x1xf32, #tpu.memory_space<vmem>>, vector<1x1x1xf32>,
    } else {
    }
    return
  }
  func.func @transform_0(%arg0: i32, %arg1: i32) -> (i32, i32, i32) {
    %c0_i32 = arith.constant 0 : i32
    %c0_i32_0 = arith.constant 0 : i32
    %c0_i32_1 = arith.constant 0 : i32
    return %arg0, %c0_i32, %c0_i32_0 : i32, i32, i32
  }
  func.func @transform_1(%arg0: i32, %arg1: i32) -> (i32, i32, i32) {
    %c0_i32 = arith.constant 0 : i32
    %c0_i32_0 = arith.constant 0 : i32
    return %arg0, %c0_i32, %arg1 : i32, i32, i32
  }
  func.func @transform_2(%arg0: i32, %arg1: i32) -> (i32, i32, i32) {
    %c0_i32 = arith.constant 0 : i32
    %c0_i32_0 = arith.constant 0 : i32
    %c0_i32_1 = arith.constant 0 : i32
    return %arg0, %c0_i32, %c0_i32_0 : i32, i32, i32
  }
  func.func @transform_3(%arg0: i32, %arg1: i32) -> (i32, i32, i32) {
    %c0_i32 = arith.constant 0 : i32
    %c0_i32_0 = arith.constant 0 : i32
    %c0_i32_1 = arith.constant 0 : i32
    return %arg0, %c0_i32, %c0_i32_0 : i32, i32, i32
  }
}

</mosaic_0001>

<bundles_post_ra>
// kernel: tpu_custom_call.1
= control target key start
LH: loop header
LB: loop body
LE: loop exit
PB: predicated region body
PF: predicated region fallthrough
CT: control target
= control target key end

     0   :  { %8 = vsyncpa [#allocation4], 0  ;;  %s845_s0 = inlined_call_operand.vmem [shape: bf16[2,16,4], index: 0, kind: input, shape index: {}]   ;;  %s846_s1 = inlined_call_operand.vmem [shape: f32[2,4,256], index: 1, kind: input, shape index: {}]   ;;  %s847_s2 = inlined_call_operand.hbm [shape: f32[2,16,16], index: 2, kind: input, shape index: {}]   ;;  %s848_s3 = inlined_call_operand.vmem [shape: f32[2,1,1], index: 3, kind: output, shape index: {}]  }
   0x1   :  { %10 = vsyncpa [#allocation4 + $0x1], 0  ;;  %s726_s12 = smov 0   ;;  %s728_s13 = smov 0  }
   0x2   :  { %s730_s14 = smov 0   ;;  %s732_s15 = smov 0  }
   0x3   :  { %s734_s16 = smov 0   ;;  %s736_s17 = smov 0  }
   0x4 LB: > { %s537_s18 = sadd.s32 4294967295, %s699_s17   ;;  %s28_s19 = sadd.s32 1, %s695_s16  ;;  %s699_s17 = sphi %s736_s17, %s16_s17   ;;  %s695_s16 = sphi %s734_s16, %s856_s16   ;;  %s691_s15 = sphi %s732_s15, %s855_s15   ;;  %s687_s14 = sphi %s730_s14, %s854_s14   ;;  %s683_s13 = sphi %s728_s13, %s853_s13   ;;  %s679_s12 = sphi %s726_s12, %s852_s12  }
   0x5   : > { %p30_p0 = scmp.ge.s32.totalorder %s28_s19, 2  ;;  %s89_s20 = sadd.s32 1, %s687_s14 }
   0x6   : > { %p96_p1 = scmp.ne.s32.totalorder %s687_s14, %s683_s13  ;;  %p97_p2 = scmp.eq.s32.totalorder %s699_s17, 0 }
   0x7   : > { %s858_s19 = smov (%p30_p0, %s28_s19), 0  ;;  %p102_p4 = scmp.ne.s32.totalorder %s683_s13, %s679_s12 }
   0x8   : > { %p762_p3 = por %p97_p2, %p96_p1  ;;  %s86_s22 = ssub.s32 %s695_s16, %s858_s19 }
   0x9   : > { %p103_p5 = scmp.eq.s32.totalorder %s537_s18, 0  ;;  %p87_p6 = scmp.eq.s32.totalorder %s86_s22, 0 }
   0xa   : > { %p566_p8 = scmp.lt.s32.totalorder %s699_s17, 2  ;;  %s173_s25 = sand.u32 1, %s687_s14  }
   0xb   : > { %p769_p7 = por %p103_p5, %p102_p4  ;;  %s555_s26 = sshll.u32 %s695_s16, 8 }
   0xc   : > { %s775_s24 = scalar_select %p87_p6, %s687_s14, %s89_s20  }
   0xd   : > { %s541_s27 = sshll.u32 %s173_s25, 4  ;;  %s183_s30 = scalar_lea.hbm %s847_s2, %s555_s26 }
   0xe   : > { %s177_s4 = scalar_lea.vmem [#allocation3], %s541_s27  ;;  %p784_p9 = pnand %p566_p8, %p762_p3 }
   0xf   : > { %s184_s5 = sshll.u32 %s177_s4, 4  ;;  %s174_s7 = scalar_lea.sflag [#allocation4], %s173_s25  ;;  %s185_s5 = int_to_ptr.vmem [resolvable:$true] %s184_s5 }
  0x10   : > { %p623_p10 = pneg %p784_p9  ;;  %s634_s8 = scalar_lea.vmem %s185_s5, 256 }
  0x11   : > { %p635_p11 = scmp.ne.s32.totalorder %s185_s5, %s634_s8  ;;  %s701_s9 = smov [#allocation3]  }
  0x12   : > { %s639_s10 = sshll.u32 %s701_s9, 4  ;;  %s640_s10 = int_to_ptr.vmem [resolvable:$false] %s639_s10 }
  0x13   : > { %p637_p12 = pnand %p635_p11, %p623_p10  ;;  %s641_s11 = scalar_lea.vmem %s640_s10, 512 }
  0x14   : > { %p642_p0 = scmp.lt.s32.totalorder %s185_s5, %s640_s10  ;;  %p643_p1 = scmp.lt.s32.totalorder %s641_s11, %s634_s8 }
  0x15   : > { %p638_p13 = pneg %p637_p12 }
  0x16   : > { %p644_p2 = por %p643_p1, %p642_p0 }
  0x18   : > { %p645_p3 = pnand %p644_p2, %p638_p13 }
  0x1a   : > { %648 = shalt.err (!%p645_p3)
}
  0x1b   : > { %s702_s12 = smov 128   ;;  %s703_s18 = smov 8  }
  0x1c   : > { %565 = dma.hbm_to_vmem [thread:$0]  (!%p784_p9), %s183_s30, 256, %s185_s5, %s174_s7, %s702_s12, %s702_s12, %s703_s18  }
  0x1d   : > { %p544_p4 = scmp.ge.s32.totalorder %s699_s17, 1  ;;  %p192_p5 = scmp.lt.s32.totalorder %s699_s17, 3 }
  0x1f   : > { %p193_p6 = pnand %p544_p4, %p192_p5 }
  0x20   : > { %s198_s20 = sand.u32 (!%p193_p6), 1, %s683_s13  }
  0x21   : > { %196 = sbr.rel (%p193_p6) target bundleno = 678 (0x2a6), region = 32  ;;  %s795_s21 = sshll.u32 (!%p193_p6), %s198_s20, 4 }
  0x22   : > { %s199_s22 = scalar_lea.sflag (!%p193_p6), [#allocation4], %s198_s20  ;;  %s202_s25 = scalar_lea.vmem (!%p193_p6), [#allocation3], %s795_s21 }
  0x26   : > { %674 = dma.done.wait (%p769_p7), %s199_s22, 256  }
  0x27   : > { %676 = vsyncadd (%p769_p7), %s199_s22, 4294967040  ;;  %p237_p8 = scmp.lt.s32.totalorder %s691_s15, 1  ;;  %v704_v0 = vmov 0   ;;  %vm280_vm0 = vcmask 1041408   ;;  %vm276_vm1 = vcmask 31744   ;;  %vm260_vm2 = vcmask 130048  }
  0x28   : > { %319 = vmatprep.mubr.bf16.mxu0 %v704_v0  ;;  %v705_v7 = vmov 0.0   ;;  %v419_v21 = vld [vmem:[%s202_s25] sm:$0xff]  ;;  %v420_v25 = vld [vmem:[%s202_s25 + $0x8] sm:$0xff]  ;;  %vm438_vm3 = vcmask 0  }
  0x29   : > { %s860_s15 = smov (!%p237_p8, %s691_s15), 1  ;;  %261 = vst.msk [vmem:[#allocation2] sm:$0xff] %vm260_vm2, %v705_v7  ;;  %262 = vst.msk [vmem:[#allocation2 + $0x8] sm:$0xff] %vm260_vm2, %v705_v7 }
  0x2a   : > { %s556_s26 = sshll.u32 %s860_s15, 3  ;;  %s254_s7 = scalar_lea.vmem %s848_s3, %s860_s15 }
  0x2b   : > { %s250_s29 = scalar_lea.vmem %s846_s1, %s556_s26  ;;  %s241_s5 = scalar_lea.vmem %s845_s0, %s556_s26 }
  0x2c   : > { %v265_v1 = vld [vmem:[%s250_s29] sm:$0xff] }
  0x2d   : > { %v267_v2 = vcombine.high %v265_v1, %v265_v1  ;;  %v269_v3 = vpack.c.bf16 %v265_v1, %v265_v1  ;;  %v620_v6 = vld [vmem:[%s241_s5] sm:$0xff]  }
  0x2f   : > { %v270_v4 = vpack.c.bf16 %v267_v2, %v267_v2  ;;  %v282_v5 = vsel %vm280_vm0, %v269_v3, 0 }
  0x30   : > { %v330_v12 = vld [vmem:[#allocation2] sm:$0xff]  ;;  %v331_v16 = vld [vmem:[#allocation2 + $0x8] sm:$0xff] }
  0x31   : > { %551 = vmatprep.subr.msk.bf16.mxu0 %vm280_vm0, %v270_v4 }
  0x32   : > { %302 = vmatpush1.bf16.msra.mxu0 %v282_v5 }
  0x35   : > { %552 = vmatmul.mubr.msk.bf16.vlgmr.msra.gmra.mxu0 %vm276_vm1, %v620_v6 }
  0xf5   : > { %v321_v8 = vpop.f32.mrf.mxu0 }
  0xf7   : > { %v323_v9 = vpop.f32.mrf.mxu0 }
  0xf8   : > { %396 = vmatprep.mubr.f32.mxu1 %v323_v9 }
  0xf9   : > { %v325_v10 = vpop.f32.mrf.mxu0 }
  0xfb   : > { %v327_v11 = vpop.f32.mrf.mxu0 }
  0xfc   : > { %360 = vmatprep.subr.mxu1 %v327_v11 }
  0xfd   : > { %361 = vmatpush1.xpose.msra.mxu1 %v325_v10 }
  0xfe   : > { %362 = vmatprep.subr.mxu1 %v323_v9 }
 0x101   : > { %363 = vmatpush1.xpose.msra.mxu1 %v321_v8 }
 0x104   : > { %397 = vmatmul.mubr.f32.vlgmr.msra.gmra.mxu1 %v321_v8 }
 0x105   : > { %401 = vmatprep.mubr.f32.mxu1 %v327_v11 }
 0x108   : > { %402 = vmatmul.mubr.f32.gmra.mxu1 %v325_v10 }
 0x1c4   : > { %v398_v13 = vpop.f32.mrf.mxu1 }
 0x1c5   : > { %v407_v14 = vadd.f32 %v398_v13, %v330_v12 }
 0x1c6   : > { %v400_v15 = vpop.f32.mrf.mxu1 }
 0x1c7   : > { %410 = vst.msk [vmem:[#allocation2] sm:$0xff] %vm260_vm2, %v407_v14 }
 0x1c8   : > { %v403_v17 = vpop.f32.mrf.mxu1 }
 0x1c9   : > { %v408_v18 = vadd.f32 %v403_v17, %v331_v16 }
 0x1ca   : > { %v405_v19 = vpop.f32.mrf.mxu1 }
 0x1cb   : > { %411 = vst.msk [vmem:[#allocation2 + $0x8] sm:$0xff] %vm260_vm2, %v408_v18 }
 0x1ce   : > { %v415_v20 = vld [vmem:[#allocation2] sm:$0xff] }
 0x1cf   : > { %v417_v22 = vmul.f32 0.001953125, %v415_v20 }
 0x1d1   : > { %v421_v23 = vsub.f32 %v417_v22, %v419_v21 }
 0x1d2   : > { %v416_v24 = vld [vmem:[#allocation2 + $0x8] sm:$0xff] }
 0x1d3   : > { %v418_v26 = vmul.f32 0.001953125, %v416_v24  ;;  %v423_v28 = vmul.f32 %v421_v23, %v421_v23 }
 0x1d5   : > { %v422_v27 = vsub.f32 %v418_v26, %v420_v25  ;;  %v425_v30 = vsel %vm260_vm2, %v423_v28, 0.0 }
 0x1d7   : > { %v424_v29 = vmul.f32 %v422_v27, %v422_v27 }
 0x1d9   : > { %v426_v31 = vsel %vm260_vm2, %v424_v29, 0.0 }
 0x1da   : > { %v427_v32 = vadd.f32 %v426_v31, %v425_v30 }
 0x1dc   : > { %428 = vadd.xlane.f32.xlu0 %v427_v32 }
 0x265   : > { %v429_v33 = vpop.xlane.xlu0 %428 }
 0x266   : > { %v430_v34 = vrot.slane %v429_v33, 4 }
 0x268   : > { %v431_v35 = vadd.f32 %v430_v34, %v429_v33 }
 0x26a   : > { %v432_v36 = vrot.slane %v431_v35, 2 }
 0x26c   : > { %v433_v37 = vadd.f32 %v432_v36, %v431_v35 }
 0x26e   : > { %v434_v38 = vrot.slane %v433_v37, 1 }
 0x270   : > { %v435_v39 = vadd.f32 %v434_v38, %v433_v37 }
 0x272   : > { %558 = vpush %v435_v39 }
 0x2a3   : > { %s559_s8 = spop %558 }
 0x2a4   : > { %v437_v40 = vstv %s559_s8 }
 0x2a5   : > { %439 = vst.msk [vmem:[%s254_s7] sm:$0x1] %vm438_vm3, %v437_v40 }
 0x2a6 PF: > { %s16_s17 = sadd.s32 1, %s699_s17   ;;  %s852_s12 = smov %s683_s13 }
 0x2a7   : > { %p13_p7 = scmp.ge.s32.totalorder %s16_s17, 4   ;;  %s853_s13 = smov %s687_s14 }
 0x2a8   : > { %s854_s14 = smov %s775_s24  ;;  %s855_s15 = smov %s695_s16 }
 0x2a9   : > { %s856_s16 = smov %s858_s19  ;;  %15 = sbr.rel (!%p13_p7) target bundleno = 4 (0x4), region = 86 }
 0x2ae   :  { %457 = vsyncpa [#allocation4], 1 }
 0x2af   :  { %459 = vsyncpa [#allocation4 + $0x1], 1 }

</bundles_post_ra>
